<compile_context>
chip_gen: v7x
topology: tpu7x:2x2x1
jax: 0.10.0
libtpu: 0.0.40
codegen_flags: <defaults>
</compile_context>

<pallas_src>
import jax
import jax.numpy as jnp
from jax.experimental import pallas as pl
from jax.experimental.pallas import tpu as pltpu

LANES = 128          # vreg lane width
PACK = 2 * LANES     # one packed row = 128 samples x 2 interleaved features


def linear_kernel(b_ref, x_ref, w_ref, o_ref):
    # b_ref: SMEM (1,) f32                       (bias scalar)
    # x_ref: VMEM (block_rows, 256) f32          (lane 2k/2k+1 = sample k's features)
    # w_ref: VMEM (256, 128) f32                 (block-diagonal selection matrix, resident)
    # o_ref: VMEM (block_rows, 128) f32          (one sample result per lane)
    o_ref[...] = (
        jnp.dot(x_ref[...], w_ref[...], preferred_element_type=jnp.float32)
        + b_ref[0]
    )


def mynet_forward(x, weight, bias, *, block_rows=1024, padded_output=False):
    """x: (B, 2) f32, weight: (1, 2) f32, bias: (1,) f32 -> (B, 1) f32.

    With padded_output=True, returns the lane-dense (rows_padded, 128) buffer
    (sample i lives at [i // 128, i % 128]) so a fused consumer can skip the
    crop copy entirely.
    """
    B, IN = x.shape
    assert IN == 2 and weight.shape == (1, 2) and bias.shape == (1,)

    rows = -(-B // LANES)                         # packed rows of 128 samples
    block_rows = min(block_rows, rows)
    block_rows = max(8, ((block_rows + 7) // 8) * 8)
    n_blocks = -(-rows // block_rows)
    rows_padded = n_blocks * block_rows
    pad = rows_padded * PACK - 2 * B

    # One contiguous pad (no strided gathers); the reshape is a free row-major
    # view.  Lane parity == feature index.
    x_packed = jnp.pad(x.reshape(-1), (0, pad)).reshape(rows_padded, PACK)
    x_packed = x_packed.astype(jnp.float32)

    # Block-diagonal selection matrix: Wsel[2k, k] = w00, Wsel[2k+1, k] = w01.
    w0 = weight[0, 0].astype(jnp.float32)
    w1 = weight[0, 1].astype(jnp.float32)
    row = jax.lax.broadcasted_iota(jnp.int32, (PACK, LANES), 0)
    col = jax.lax.broadcasted_iota(jnp.int32, (PACK, LANES), 1)
    wsel = (jnp.where(row == 2 * col, w0, 0.0)
            + jnp.where(row == 2 * col + 1, w1, 0.0)).astype(jnp.float32)

    out_padded = pl.pallas_call(
        linear_kernel,
        out_shape=jax.ShapeDtypeStruct((rows_padded, LANES), jnp.float32),
        grid=(n_blocks,),
        in_specs=[
            pl.BlockSpec(memory_space=pltpu.MemorySpace.SMEM),      # bias (1,)
            pl.BlockSpec((block_rows, PACK), lambda i: (i, 0)),     # packed x
            pl.BlockSpec((PACK, LANES), lambda i: (0, 0)),          # Wsel (resident)
        ],
        out_specs=pl.BlockSpec((block_rows, LANES), lambda i: (i, 0)),
        compiler_params=pltpu.CompilerParams(
            dimension_semantics=("parallel",)),
        cost_estimate=pl.CostEstimate(
            flops=2 * rows_padded * PACK * LANES,
            transcendentals=0,
            bytes_accessed=4 * (rows_padded * PACK + rows_padded * LANES
                                + PACK * LANES + 1)),
    )(bias.astype(jnp.float32), x_packed, wsel)

    if padded_output:
        return out_padded
    # Restore torch.nn.Linear's (B, 1) output (fuses under the caller's jit).
    return out_padded.reshape(-1)[:B].reshape(B, 1)


if __name__ == "__main__":
    # Deterministic parameter init (shapes from nn.Linear(2, 1)).
    key = jax.random.PRNGKey(0)
    kw, kb, kx = jax.random.split(key, 3)
    bound = 1.0 / jnp.sqrt(2.0)  # PyTorch default: U(-1/sqrt(in), 1/sqrt(in))
    weight = jax.random.uniform(kw, (1, 2), jnp.float32, -bound, bound)
    bias = jax.random.uniform(kb, (1,), jnp.float32, -bound, bound)

    def ref_fn(a):
        # Exact f32 elementwise reference (no matmul truncation on the ref path).
        return a[:, 0:1] * weight[0, 0] + a[:, 1:2] * weight[0, 1] + bias[0]

    fwd = jax.jit(mynet_forward,
                  static_argnames=("block_rows", "padded_output"))

    # 1) The original module's input: batch of 2 (single-block, 1-step grid).
    x = jnp.array([[0.1, 0.8], [0.8, 0.2]], dtype=jnp.float32)
    out = fwd(x, weight, bias)
    jax.block_until_ready(out)
    assert out.shape == (2, 1), out.shape
    assert jnp.allclose(out, ref_fn(x), atol=1e-2, rtol=1e-2), (out, ref_fn(x))

    # 2) Larger batch with a small block size to exercise the multi-step grid,
    #    the batch padding and the output crop.
    x2 = jax.random.uniform(kx, (3000, 2), jnp.float32, -1.0, 1.0)
    out2 = fwd(x2, weight, bias, block_rows=8)
    jax.block_until_ready(out2)
    assert out2.shape == (3000, 1), out2.shape
    assert jnp.allclose(out2, ref_fn(x2), atol=1e-2, rtol=1e-2)

    print("KERNEL_OK")
</pallas_src>

<mosaic_0001>
module attributes {stable_mosaic.version = 11 : i64} {
  func.func @linear_kernel(%arg0: i32, %arg1: memref<1xf32, #tpu.memory_space<smem>>, %arg2: memref<8x256xf32, #tpu.memory_space<vmem>>, %arg3: memref<256x128xf32, #tpu.memory_space<vmem>>, %arg4: memref<8x128xf32, #tpu.memory_space<vmem>>) attributes {dimension_semantics = [#tpu.dimension_semantics<parallel>], iteration_bounds = array<i64: 1>, scalar_prefetch = 0 : i64, scratch_operands = 0 : i64, tpu.core_type = #tpu.core_type<tc>, window_params = [{transform_indices = @transform_0, window_bounds = array<i64: 1>}, {transform_indices = @transform_1, window_bounds = array<i64: 8, 256>}, {pipeline_mode = #tpu.pipeline_mode<synchronous>, transform_indices = @transform_2, window_bounds = array<i64: 256, 128>}, {transform_indices = @transform_3, window_bounds = array<i64: 8, 128>}]} {
    %c0 = arith.constant 0 : index
    %c0_0 = arith.constant 0 : index
    %0 = vector.load %arg2[%c0, %c0_0] : memref<8x256xf32, #tpu.memory_space<vmem>>, vector<8x256xf32>
    %c0_1 = arith.constant 0 : index
    %c0_2 = arith.constant 0 : index
    %1 = vector.load %arg3[%c0_1, %c0_2] : memref<256x128xf32, #tpu.memory_space<vmem>>, vector<256x128xf32>
    %cst = arith.constant dense<0.000000e+00> : vector<8x128xf32>
    %2 = tpu.matmul %0, %1, %cst {dimension_numbers = #tpu.dot_dimension_numbers<[1], [0], [0], [1], [0, 0, 1, 1], [], []>} : vector<8x256xf32>, vector<256x128xf32>, vector<8x128xf32> -> vector<8x128xf32>
    %c0_3 = arith.constant 0 : index
    %3 = memref.load %arg1[%c0_3] : memref<1xf32, #tpu.memory_space<smem>>
    %4 = vector.broadcast %3 : f32 to vector<8x128xf32>
    %5 = arith.addf %2, %4 : vector<8x128xf32>
    %c0_4 = arith.constant 0 : index
    %c0_5 = arith.constant 0 : index
    %6 = vector.load %arg4[%c0_4, %c0_5] : memref<8x128xf32, #tpu.memory_space<vmem>>, vector<8x128xf32>
    tpu.vector_store %arg4[%c0_4, %c0_5], %5 {strides = array<i32>} : memref<8x128xf32, #tpu.memory_space<vmem>>, vector<8x128xf32>,
    return
  }
  func.func @transform_0(%arg0: i32) -> i32 {
    %c0_i32 = arith.constant 0 : i32
    %c0_i32_0 = arith.constant 0 : i32
    return %c0_i32 : i32
  }
  func.func @transform_1(%arg0: i32) -> (i32, i32) {
    %c0_i32 = arith.constant 0 : i32
    %c0_i32_0 = arith.constant 0 : i32
    return %arg0, %c0_i32 : i32, i32
  }
  func.func @transform_2(%arg0: i32) -> (i32, i32) {
    %c0_i32 = arith.constant 0 : i32
    %c0_i32_0 = arith.constant 0 : i32
    %c0_i32_1 = arith.constant 0 : i32
    return %c0_i32, %c0_i32_0 : i32, i32
  }
  func.func @transform_3(%arg0: i32) -> (i32, i32) {
    %c0_i32 = arith.constant 0 : i32
    %c0_i32_0 = arith.constant 0 : i32
    return %arg0, %c0_i32 : i32, i32
  }
}

</mosaic_0001>

<bundles_post_ra>
// kernel: mynet_forward.1
= control target key start
LH: loop header
LB: loop body
LE: loop exit
PB: predicated region body
PF: predicated region fallthrough
CT: control target
= control target key end

     0   :  { %s321_s2 = inlined_call_operand.vmem [shape: f32[256,128], index: 2, kind: input, shape index: {}]   ;;  %s322_s1 = inlined_call_operand.vmem [shape: f32[8,256], index: 1, kind: input, shape index: {}]   ;;  %s323_s0 = inlined_call_operand.<no memory space> [shape: f32[1], index: 0, kind: input, shape index: {}]   ;;  %s324_s3 = inlined_call_operand.vmem [shape: f32[8,128], index: 3, kind: output, shape index: {}]  }
   0x1   :  { %v33_v0 = vld [vmem:[%s321_s2 + $0x80] sm:$0xff]  ;;  %v34_v1 = vld [vmem:[%s321_s2 + $0x88] sm:$0xff]  ;;  %v35_v5 = vld [vmem:[%s321_s2 + $0x90] sm:$0xff]  ;;  %v50_v51 = vstv %s323_s0 }
   0x2   :  { %v17_v2 = vld [vmem:[%s321_s2] sm:$0xff]  ;;  %v161_v3 = vpack.c.bf16 %v34_v1, %v33_v0  ;;  %v18_v4 = vld [vmem:[%s321_s2 + $0x8] sm:$0xff]  ;;  %v36_v6 = vld [vmem:[%s321_s2 + $0x98] sm:$0xff] }
   0x3   :  { %v163_v7 = vpack.c.bf16 %v18_v4, %v17_v2  ;;  %v165_v8 = vpack.c.bf16 %v36_v6, %v35_v5  ;;  %v19_v9 = vld [vmem:[%s321_s2 + $0x10] sm:$0xff]  ;;  %v20_v10 = vld [vmem:[%s321_s2 + $0x18] sm:$0xff]  ;;  %v37_v11 = vld [vmem:[%s321_s2 + $0xa0] sm:$0xff] }
   0x4   :  { %162 = vmatprep.subr.bf16.mxu0 %v161_v3  ;;  %v38_v12 = vld [vmem:[%s321_s2 + $0xa8] sm:$0xff]  ;;  %v167_v13 = vpack.c.bf16 %v20_v10, %v19_v9  ;;  %v21_v15 = vld [vmem:[%s321_s2 + $0x20] sm:$0xff]  ;;  %v39_v17 = vld [vmem:[%s321_s2 + $0xb0] sm:$0xff] }
   0x5   :  { %164 = vmatpush3.bf16.msra.mxu0 %v163_v7  ;;  %v169_v14 = vpack.c.bf16 %v38_v12, %v37_v11  ;;  %v22_v16 = vld [vmem:[%s321_s2 + $0x28] sm:$0xff]  ;;  %v40_v18 = vld [vmem:[%s321_s2 + $0xb8] sm:$0xff]  ;;  %v23_v21 = vld [vmem:[%s321_s2 + $0x30] sm:$0xff] }
   0x6   :  { %166 = vmatprep.subr.bf16.mxu0 %v165_v8  ;;  %v171_v19 = vpack.c.bf16 %v22_v16, %v21_v15  ;;  %v173_v20 = vpack.c.bf16 %v40_v18, %v39_v17  ;;  %v24_v22 = vld [vmem:[%s321_s2 + $0x38] sm:$0xff]  ;;  %v41_v23 = vld [vmem:[%s321_s2 + $0xc0] sm:$0xff]  ;;  %v42_v24 = vld [vmem:[%s321_s2 + $0xc8] sm:$0xff] }
   0x7   :  { %v16_v25 = vld [vmem:[%s322_s1 + $0x8] sm:$0xff]  ;;  %v175_v26 = vpack.c.bf16 %v24_v22, %v23_v21  ;;  %v177_v27 = vpack.c.bf16 %v42_v24, %v41_v23  ;;  %v25_v28 = vld [vmem:[%s321_s2 + $0x40] sm:$0xff]  ;;  %v43_v30 = vld [vmem:[%s321_s2 + $0xd0] sm:$0xff] }
   0x8   :  { %115 = vmatprep.mubr.f32.mxu0 %v16_v25  ;;  %v26_v29 = vld [vmem:[%s321_s2 + $0x48] sm:$0xff]  ;;  %v44_v31 = vld [vmem:[%s321_s2 + $0xd8] sm:$0xff]  ;;  %v27_v34 = vld [vmem:[%s321_s2 + $0x50] sm:$0xff] }
   0x9   :  { %168 = vmatpush3.bf16.msra.mxu0 %v167_v13  ;;  %v179_v32 = vpack.c.bf16 %v26_v29, %v25_v28  ;;  %v181_v33 = vpack.c.bf16 %v44_v31, %v43_v30  ;;  %v28_v35 = vld [vmem:[%s321_s2 + $0x58] sm:$0xff]  ;;  %v45_v36 = vld [vmem:[%s321_s2 + $0xe0] sm:$0xff]  ;;  %v46_v37 = vld [vmem:[%s321_s2 + $0xe8] sm:$0xff] }
   0xa   :  { %170 = vmatprep.subr.bf16.mxu0 %v169_v14  ;;  %v183_v38 = vpack.c.bf16 %v28_v35, %v27_v34  ;;  %v185_v39 = vpack.c.bf16 %v46_v37, %v45_v36  ;;  %v29_v40 = vld [vmem:[%s321_s2 + $0x60] sm:$0xff]  ;;  %v30_v41 = vld [vmem:[%s321_s2 + $0x68] sm:$0xff]  ;;  %v47_v42 = vld [vmem:[%s321_s2 + $0xf0] sm:$0xff] }
   0xb   :  { %v48_v43 = vld [vmem:[%s321_s2 + $0xf8] sm:$0xff]  ;;  %v187_v44 = vpack.c.bf16 %v30_v41, %v29_v40  ;;  %v31_v46 = vld [vmem:[%s321_s2 + $0x70] sm:$0xff]  ;;  %v15_v49 = vld [vmem:[%s322_s1] sm:$0xff] }
   0xc   :  { %v189_v45 = vpack.c.bf16 %v48_v43, %v47_v42  ;;  %v32_v47 = vld [vmem:[%s321_s2 + $0x78] sm:$0xff] }
   0xd   :  { %172 = vmatpush3.bf16.msra.mxu0 %v171_v19  ;;  %v191_v48 = vpack.c.bf16 %v32_v47, %v31_v46 }
   0xe   :  { %174 = vmatprep.subr.bf16.mxu0 %v173_v20 }
  0x11   :  { %176 = vmatpush3.bf16.msra.mxu0 %v175_v26 }
  0x12   :  { %178 = vmatprep.subr.bf16.mxu0 %v177_v27 }
  0x15   :  { %180 = vmatpush3.bf16.msra.mxu0 %v179_v32 }
  0x16   :  { %182 = vmatprep.subr.bf16.mxu0 %v181_v33 }
  0x19   :  { %184 = vmatpush3.bf16.msra.mxu0 %v183_v38 }
  0x1a   :  { %186 = vmatprep.subr.bf16.mxu0 %v185_v39 }
  0x1d   :  { %188 = vmatpush3.bf16.msra.mxu0 %v187_v44 }
  0x1e   :  { %190 = vmatprep.subr.bf16.mxu0 %v189_v45 }
  0x21   :  { %192 = vmatpush3.bf16.msra.mxu0 %v191_v48 }
  0x24   :  { %116 = vmatmul.mubr.f32.vlgmr.msra.gmra.mrb[0].mxu0 %v15_v49 }
  0xf7   :  { %v158_v50 = vpop.f32.mrb[0].mxu0 }
  0xf8   :  { %v159_v52 = vpop.f32.mrb[1].mxu0 }
  0xf9   :  { %v160_v53 = vadd.f32 %v159_v52, %v158_v50 }
  0xfb   :  { %v118_v54 = vadd.f32 %v160_v53, %v50_v51 }
  0xfd   :  { %121 = vst [vmem:[%s324_s3] sm:$0xff] %v118_v54 }

</bundles_post_ra>
